<compile_context>
chip_gen: v7x
topology: tpu7x:2x2x1
jax: 0.10.0
libtpu: 0.0.40
codegen_flags: <defaults>
</compile_context>

<pallas_src>
import functools

import jax
import jax.numpy as jnp
from jax.experimental import pallas as pl
from jax.experimental.pallas import tpu as pltpu

KH, KW = 6, 6
STRIDE = 2
PAD = 2
EPS = 1e-7

VMEM_BUDGET_BYTES = 24 * 1024 * 1024   # conservative double-buffer budget (v7x-safe)
FB_TARGET = 16                         # max frames per grid step


def _early_conv_kernel(p_ref, w_ref, b_ref, o_ref, *, fb, ph_pw, cout, k):
    # p_ref: (4, FB, PH*PW, K)   im2col patches, leading dim = 2x2 pool position
    # w_ref: (K, Cout)           flattened conv weights (kh, kw, ci) order
    # b_ref: (1, Cout)           conv bias
    # o_ref: (FB, PH*PW, Cout)
    rows = 4 * fb * ph_pw
    p = p_ref[...].reshape(rows, k)                     # collapse leading dims (free)
    # single fat MXU matmul per grid step, f32 accumulation
    y = jnp.dot(p, w_ref[...], preferred_element_type=jnp.float32)
    y = y + b_ref[...]                                  # conv bias
    y = jnp.maximum(y, 0.0)                             # ReLU
    # MaxPool3d((1,2,2),(1,2,2)): the 4 pool-window positions are 4 contiguous
    # static row blocks -> pure VPU element-wise maxima, no relayout.
    s = fb * ph_pw
    m = jnp.maximum(jnp.maximum(y[0 * s:1 * s], y[1 * s:2 * s]),
                    jnp.maximum(y[2 * s:3 * s], y[3 * s:4 * s]))   # (FB*PH*PW, Cout)
    # layer_norm_by_dim over channels (last dim): unbiased var (/(C-1)) + eps 1e-7
    mean = jnp.mean(m, axis=-1, keepdims=True)
    yc = m - mean
    var = jnp.sum(yc * yc, axis=-1, keepdims=True) * (1.0 / (cout - 1))
    # exact rsqrt (EUP); approximate reciprocal would break the 1e-4 tolerance
    o_ref[...] = (yc * jax.lax.rsqrt(var + EPS)).reshape(fb, ph_pw, cout)


def _pick_frame_batch(nt, frame_bytes):
    """Largest divisor of nt that fits the VMEM budget, keeps >=2 grid steps."""
    cap = max(1, VMEM_BUDGET_BYTES // (2 * max(frame_bytes, 1)))  # 2x: double buffer
    cap = min(cap, FB_TARGET, nt)
    if nt > 1:
        cap = min(cap, max(1, nt // 2))   # >=2 grid iterations (v7x: 2 TensorCores)
    for d in range(cap, 0, -1):
        if nt % d == 0:
            return d
    return 1


def early_convolution(x, w, b, *, use_bf16_inputs=False):
    """x: (N, Cin, T, H, W) f32 (PyTorch NCTHW), w: (Cout, Cin, 1, KH, KW), b: (Cout,).

    use_bf16_inputs: cast patches/weights to bf16 (f32 accumulation) — recommended
    on v6e/v7x to halve HBM traffic; loosens accuracy to ~1e-3.
    """
    N, Cin, T, H, W = x.shape
    Cout = w.shape[0]
    OH = (H + 2 * PAD - KH) // STRIDE + 1
    OW = (W + 2 * PAD - KW) // STRIDE + 1
    assert OH % 2 == 0 and OW % 2 == 0, "maxpool expects even conv-output size here"
    PH, PW = OH // 2, OW // 2
    S = PH * PW
    NT = N * T
    K = KH * KW * Cin

    in_dtype = jnp.bfloat16 if use_bf16_inputs else jnp.float32

    # ---- glue: channels-last frames, zero pad ----
    xf = jnp.transpose(x, (0, 2, 3, 4, 1)).reshape(NT, H, W, Cin)
    xp = jnp.pad(xf, ((0, 0), (PAD, PAD), (PAD, PAD), (0, 0)))

    # im2col built directly in (pool_pos, frame, ph*pw, K) order (single pass,
    # no post-hoc reorder transpose of the 9x-expanded patches array).
    # conv output (2*ph+i, 2*pw+j) reads padded input row 4*ph + 2*i + kh,
    # col 4*pw + 2*j + kw.
    pool_blocks = []
    for i in range(2):
        for j in range(2):
            cols = []
            for kh in range(KH):
                for kw in range(KW):
                    r0 = 2 * i + kh
                    c0 = 2 * j + kw
                    cols.append(xp[:, r0:r0 + 4 * PH:4, c0:c0 + 4 * PW:4, :])
            # (NT, PH, PW, KH*KW, Cin) -> (NT, PH*PW, K), K ordered (kh, kw, ci)
            pool_blocks.append(jnp.stack(cols, axis=3).reshape(NT, S, K))
    patches = jnp.stack(pool_blocks, axis=0).astype(in_dtype)       # (4, NT, S, K)

    # weights flattened in matching (kh, kw, ci) order
    w_flat = jnp.transpose(w[:, :, 0, :, :], (2, 3, 1, 0)).reshape(K, Cout).astype(in_dtype)
    b2 = b.reshape(1, Cout).astype(jnp.float32)

    isz = jnp.dtype(in_dtype).itemsize
    frame_bytes = 4 * S * K * isz
    FB = _pick_frame_batch(NT, frame_bytes)
    grid = (NT // FB,)

    kern = functools.partial(_early_conv_kernel, fb=FB, ph_pw=S, cout=Cout, k=K)
    cost = pl.CostEstimate(
        flops=2 * NT * 4 * S * K * Cout,
        transcendentals=NT * S,                                   # one rsqrt per output row
        bytes_accessed=(4 * NT * S * K * isz                      # patches
                        + K * Cout * isz + Cout * 4               # weights + bias
                        + NT * S * Cout * 4),                     # output
    )

    # TODO(synk): if production conv_dim >= 128 the output lane dim is already
    # dense; for tiny Cout (16) lane-padding weights to 128 + masked layer norm
    # could remove masked stores but adds an 8x output HBM write — skipped.
    out = pl.pallas_call(
        kern,
        out_shape=jax.ShapeDtypeStruct((NT, S, Cout), jnp.float32),
        grid=grid,
        in_specs=[
            pl.BlockSpec((4, FB, S, K), lambda i: (0, i, 0, 0)),
            pl.BlockSpec((K, Cout), lambda i: (0, 0)),
            pl.BlockSpec((1, Cout), lambda i: (0, 0)),
        ],
        out_specs=pl.BlockSpec((FB, S, Cout), lambda i: (i, 0, 0)),
        compiler_params=pltpu.CompilerParams(
            dimension_semantics=("parallel",),
            vmem_limit_bytes=32 * 1024 * 1024,
        ),
        cost_estimate=cost,
    )(patches, w_flat, b2)

    # back to PyTorch layout: (N, Cout, T, PH, PW)
    out = out.reshape(N, T, PH, PW, Cout)
    return jnp.transpose(out, (0, 4, 1, 2, 3))


def reference_early_convolution(x, w, b):
    """Pure-JAX reference of the PyTorch forward pass (NCTHW layout)."""
    y = jax.lax.conv_general_dilated(
        x, w, window_strides=(1, STRIDE, STRIDE),
        padding=[(0, 0), (PAD, PAD), (PAD, PAD)],
        dimension_numbers=("NCDHW", "OIDHW", "NCDHW"))
    y = y + b[None, :, None, None, None]
    y = jnp.maximum(y, 0.0)
    y = jax.lax.reduce_window(y, -jnp.inf, jax.lax.max,
                              (1, 1, 1, 2, 2), (1, 1, 1, 2, 2), "VALID")
    mean = jnp.mean(y, axis=1, keepdims=True)
    yc = y - mean
    var = jnp.sum(yc * yc, axis=1, keepdims=True) / (y.shape[1] - 1)
    return yc / jnp.sqrt(var + EPS)


if __name__ == "__main__":
    key = jax.random.PRNGKey(0)
    k1, k2, k3 = jax.random.split(key, 3)

    N, Cin, T, H, W = 2, 3, 2, 16, 16
    conv_dim = 16

    x = jax.random.normal(k1, (N, Cin, T, H, W), jnp.float32)
    # deterministic synthetic parameters (Conv3d weight/bias shapes from __init__)
    w_conv = 0.1 * jax.random.normal(k2, (conv_dim, Cin, 1, KH, KW), jnp.float32)
    b_conv = 0.1 * jax.random.normal(k3, (conv_dim,), jnp.float32)

    out = early_convolution(x, w_conv, b_conv)
    out = jax.block_until_ready(out)

    ref = reference_early_convolution(x, w_conv, b_conv)
    assert out.shape == ref.shape, (out.shape, ref.shape)
    assert jnp.allclose(out, ref, atol=1e-4, rtol=1e-4), float(jnp.max(jnp.abs(out - ref)))
    print("KERNEL_OK")
</pallas_src>

<mosaic_0001>
module attributes {stable_mosaic.version = 11 : i64} {
  func.func @_early_conv_kernel(%arg0: i32, %arg1: memref<4x2x16x108xf32, #tpu.memory_space<vmem>>, %arg2: memref<108x16xf32, #tpu.memory_space<vmem>>, %arg3: memref<1x16xf32, #tpu.memory_space<vmem>>, %arg4: memref<2x16x16xf32, #tpu.memory_space<vmem>>) attributes {dimension_semantics = [#tpu.dimension_semantics<parallel>], iteration_bounds = array<i64: 2>, scalar_prefetch = 0 : i64, scratch_operands = 0 : i64, tpu.core_type = #tpu.core_type<tc>, window_params = [{transform_indices = @transform_0, window_bounds = array<i64: 4, 2, 16, 108>}, {pipeline_mode = #tpu.pipeline_mode<synchronous>, transform_indices = @transform_1, window_bounds = array<i64: 108, 16>}, {pipeline_mode = #tpu.pipeline_mode<synchronous>, transform_indices = @transform_2, window_bounds = array<i64: 1, 16>}, {transform_indices = @transform_3, window_bounds = array<i64: 2, 16, 16>}]} {
    %c0 = arith.constant 0 : index
    %c0_0 = arith.constant 0 : index
    %c0_1 = arith.constant 0 : index
    %c0_2 = arith.constant 0 : index
    %0 = vector.load %arg1[%c0, %c0_0, %c0_1, %c0_2] : memref<4x2x16x108xf32, #tpu.memory_space<vmem>>, vector<4x2x16x108xf32>
    %1 = vector.shape_cast %0 : vector<4x2x16x108xf32> to vector<128x108xf32>
    %c0_3 = arith.constant 0 : index
    %c0_4 = arith.constant 0 : index
    %2 = vector.load %arg2[%c0_3, %c0_4] : memref<108x16xf32, #tpu.memory_space<vmem>>, vector<108x16xf32>
    %cst = arith.constant dense<0.000000e+00> : vector<128x16xf32>
    %3 = tpu.matmul %1, %2, %cst {dimension_numbers = #tpu.dot_dimension_numbers<[1], [0], [0], [1], [0, 0, 1, 1], [], []>} : vector<128x108xf32>, vector<108x16xf32>, vector<128x16xf32> -> vector<128x16xf32>
    %c0_5 = arith.constant 0 : index
    %c0_6 = arith.constant 0 : index
    %4 = vector.load %arg3[%c0_5, %c0_6] : memref<1x16xf32, #tpu.memory_space<vmem>>, vector<1x16xf32>
    %5 = vector.broadcast %4 : vector<1x16xf32> to vector<128x16xf32>
    %6 = arith.addf %3, %5 : vector<128x16xf32>
    %cst_7 = arith.constant 0.000000e+00 : f32
    %7 = vector.broadcast %cst_7 : f32 to vector<128x16xf32>
    %8 = arith.maximumf %6, %7 : vector<128x16xf32>
    %9 = vector.extract_strided_slice %8 {offsets = [0, 0], sizes = [32, 16], strides = [1, 1]} : vector<128x16xf32> to vector<32x16xf32>
    %10 = vector.extract_strided_slice %8 {offsets = [32, 0], sizes = [32, 16], strides = [1, 1]} : vector<128x16xf32> to vector<32x16xf32>
    %11 = arith.maximumf %9, %10 : vector<32x16xf32>
    %12 = vector.extract_strided_slice %8 {offsets = [64, 0], sizes = [32, 16], strides = [1, 1]} : vector<128x16xf32> to vector<32x16xf32>
    %13 = vector.extract_strided_slice %8 {offsets = [96, 0], sizes = [32, 16], strides = [1, 1]} : vector<128x16xf32> to vector<32x16xf32>
    %14 = arith.maximumf %12, %13 : vector<32x16xf32>
    %15 = arith.maximumf %11, %14 : vector<32x16xf32>
    %cst_8 = arith.constant dense<0.000000e+00> : vector<32xf32>
    %16 = vector.multi_reduction <add>, %15, %cst_8 [1] : vector<32x16xf32> to vector<32xf32>
    %17 = vector.shape_cast %16 : vector<32xf32> to vector<32x1xf32>
    %cst_9 = arith.constant 1.600000e+01 : f32
    %18 = vector.broadcast %cst_9 : f32 to vector<32x1xf32>
    %19 = arith.divf %17, %18 : vector<32x1xf32>
    %20 = vector.broadcast %19 : vector<32x1xf32> to vector<32x16xf32>
    %21 = arith.subf %15, %20 : vector<32x16xf32>
    %22 = arith.mulf %21, %21 : vector<32x16xf32>
    %cst_10 = arith.constant dense<0.000000e+00> : vector<32xf32>
    %23 = vector.multi_reduction <add>, %22, %cst_10 [1] : vector<32x16xf32> to vector<32xf32>
    %24 = vector.shape_cast %23 : vector<32xf32> to vector<32x1xf32>
    %cst_11 = arith.constant 0.0666666701 : f32
    %25 = vector.broadcast %cst_11 : f32 to vector<32x1xf32>
    %26 = arith.mulf %24, %25 : vector<32x1xf32>
    %cst_12 = arith.constant 1.000000e-07 : f32
    %27 = vector.broadcast %cst_12 : f32 to vector<32x1xf32>
    %28 = arith.addf %26, %27 : vector<32x1xf32>
    %29 = math.rsqrt %28 : vector<32x1xf32>
    %30 = vector.broadcast %29 : vector<32x1xf32> to vector<32x16xf32>
    %31 = arith.mulf %21, %30 : vector<32x16xf32>
    %32 = vector.shape_cast %31 : vector<32x16xf32> to vector<2x16x16xf32>
    %c0_13 = arith.constant 0 : index
    %c0_14 = arith.constant 0 : index
    %c0_15 = arith.constant 0 : index
    %33 = vector.load %arg4[%c0_13, %c0_14, %c0_15] : memref<2x16x16xf32, #tpu.memory_space<vmem>>, vector<2x16x16xf32>
    tpu.vector_store %arg4[%c0_13, %c0_14, %c0_15], %32 {strides = array<i32>} : memref<2x16x16xf32, #tpu.memory_space<vmem>>, vector<2x16x16xf32>,
    return
  }
  func.func @transform_0(%arg0: i32) -> (i32, i32, i32, i32) {
    %c0_i32 = arith.constant 0 : i32
    %c0_i32_0 = arith.constant 0 : i32
    %c0_i32_1 = arith.constant 0 : i32
    %c0_i32_2 = arith.constant 0 : i32
    return %c0_i32, %arg0, %c0_i32_0, %c0_i32_1 : i32, i32, i32, i32
  }
  func.func @transform_1(%arg0: i32) -> (i32, i32) {
    %c0_i32 = arith.constant 0 : i32
    %c0_i32_0 = arith.constant 0 : i32
    %c0_i32_1 = arith.constant 0 : i32
    return %c0_i32, %c0_i32_0 : i32, i32
  }
  func.func @transform_2(%arg0: i32) -> (i32, i32) {
    %c0_i32 = arith.constant 0 : i32
    %c0_i32_0 = arith.constant 0 : i32
    %c0_i32_1 = arith.constant 0 : i32
    return %c0_i32, %c0_i32_0 : i32, i32
  }
  func.func @transform_3(%arg0: i32) -> (i32, i32, i32) {
    %c0_i32 = arith.constant 0 : i32
    %c0_i32_0 = arith.constant 0 : i32
    %c0_i32_1 = arith.constant 0 : i32
    return %arg0, %c0_i32, %c0_i32_0 : i32, i32, i32
  }
}

</mosaic_0001>

<bundles_post_ra>
// kernel: tpu_custom_call.1
= control target key start
LH: loop header
LB: loop body
LE: loop exit
PB: predicated region body
PF: predicated region fallthrough
CT: control target
= control target key end

     0   :  { %8 = vsyncpa [#allocation3], 0  ;;  %s1188_s0 = inlined_call_operand.hbm [shape: f32[4,4,16,108], index: 0, kind: input, shape index: {}]   ;;  %s1189_s1 = inlined_call_operand.vmem [shape: f32[108,16], index: 1, kind: input, shape index: {}]   ;;  %s1190_s2 = inlined_call_operand.vmem [shape: f32[1,16], index: 2, kind: input, shape index: {}]   ;;  %s1191_s3 = inlined_call_operand.hbm [shape: f32[4,16,16], index: 3, kind: output, shape index: {}]  }
   0x1   :  { %10 = vsyncpa [#allocation3 + $0x1], 0 }
   0x2   :  { %11 = vsyncpa [#allocation4], 0 }
   0x3   :  { %13 = vsyncpa [#allocation4 + $0x1], 0  ;;  %s955_s12 = smov 0   ;;  %s957_s13 = smov 0  }
   0x4   :  { %s959_s14 = smov 0   ;;  %s961_s15 = smov 0  }
   0x5 LB: > { %s976_s16 = sadd.s32 4294967295, %s923_s15   ;;  %s626_s17 = sadd.s32 4294967294, %s923_s15   ;;  %s923_s15 = sphi %s961_s15, %s1199_s15   ;;  %s919_s14 = sphi %s959_s14, %s1198_s14   ;;  %s915_s13 = sphi %s957_s13, %s1197_s13   ;;  %s911_s12 = sphi %s955_s12, %s1196_s12  }
   0x6   : > { %s980_s18 = sadd.s32 1, %s923_s15   ;;  %s26_s19 = sadd.s32 1, %s919_s14 }
   0x7   : > { %s23_s20 = ssub.s32 %s923_s15, %s980_s18  ;;  %p33_p0 = scmp.ne.s32.totalorder %s919_s14, %s915_s13 }
   0x8   : > { %p24_p1 = scmp.eq.s32.totalorder %s23_s20, 0  ;;  %p34_p2 = scmp.eq.s32.totalorder %s923_s15, 0 }
   0x9   : > { %p39_p3 = scmp.ne.s32.totalorder %s915_s13, %s911_s12  ;;  %p40_p4 = scmp.eq.s32.totalorder %s976_s16, 0 }
   0xa   : > { %s992_s21 = scalar_select %p24_p1, %s919_s14, %s26_s19  }
   0xb   : > { %p994_p5 = por %p34_p2, %p33_p0  ;;  %p998_p6 = por %p40_p4, %p39_p3 }
   0xc   : > { %p105_p7 = scmp.eq.s32.totalorder %s976_s16, 1  ;;  %p111_p8 = scmp.eq.s32.totalorder %s626_s17, 1 }
   0xd   : > { %p628_p11 = scmp.ge.s32.totalorder %s923_s15, 2 }
   0xe   : > { %p1003_p9 = por %p105_p7, %p33_p0  ;;  %p1007_p10 = por %p111_p8, %p39_p3 }
   0xf   : > { %133 = sbr.rel (%p628_p11) target bundleno = 35 (0x23), region = 24 }
  0x16   : > { %s137_s26 = sand.u32 1, %s919_s14   ;;  %s663_s27 = sshll.u32 %s923_s15, 9 }
  0x17   : > { %s629_s28 = sshll.u32 %s137_s26, 7  ;;  %s148_s4 = scalar_lea.hbm %s1188_s0, %s663_s27 }
  0x18   : > { %s792_s5 = scalar_select %p994_p5, [#allocation0], [#allocation8] }
  0x19   : > { %s141_s6 = scalar_lea.vmem [#allocation2], %s629_s28  ;;  %s925_s9 = smov 1024  }
  0x1a   : > { %s161_s7 = sshll.u32 %s141_s6, 4  ;;  %s153_s8 = sld [smem:[%s792_s5]]   ;;  %s162_s7 = int_to_ptr.vmem [resolvable:$true] %s161_s7 }
  0x1b   : > { %793 = sst [smem:[#allocation7]] (%p994_p5), %s925_s9  ;;  %s926_s10 = smov 512  }
  0x1c   : > { %794 = sst [smem:[#allocation7 + $0x1]] (%p994_p5), %s926_s10  ;;  %s927_s11 = smov 4  }
  0x1d   : > { %795 = sst [smem:[#allocation7 + $0x2]] (%p994_p5), %s927_s11  ;;  %s928_s17 = smov 128  }
  0x1e   : > { %796 = sst [smem:[#allocation7 + $0x3]] (%p994_p5), %s928_s17  ;;  %s929_s20 = smov 8  }
  0x1f   : > { %797 = sst [smem:[#allocation7 + $0x4]] (%p994_p5), %s928_s17  ;;  %s138_s28 = scalar_lea.sflag [#allocation3], %s137_s26 }
  0x20   : > { %s633_s19 = sshll.u32 %s153_s8, 26  ;;  %798 = sst [smem:[#allocation7 + $0x5]] (%p994_p5), %s929_s20 }
  0x21   : > { %s634_s27 = sadd.s32 134217728, %s633_s19  ;;  %s930_s29 = smov [#allocation6]  }
  0x22   : > { %799 = dma.general (%p994_p5), %s148_s4, 2048, %s162_s7, %s138_s28, %s930_s29, [#allocation7], %s634_s27, 0  }
  0x23 PF: > { %p635_p12 = scmp.ge.s32.totalorder %s923_s15, 1  ;;  %p182_p13 = scmp.lt.s32.totalorder %s923_s15, 3 }
  0x25   : > { %p183_p0 = pnand %p635_p12, %p182_p13 }
  0x26   : > { %s1038_s30 = sand.u32 (!%p183_p0), 1, %s915_s13  }
  0x27   : > { %186 = sbr.rel (%p183_p0) target bundleno = 639 (0x27f), region = 32  ;;  %s636_s5 = sshll.u32 (!%p183_p0), %s1038_s30, 7 }
  0x28   : > { %s189_s6 = scalar_lea.sflag (!%p183_p0), [#allocation3], %s1038_s30  ;;  %s1042_s8 = scalar_lea.vmem (!%p183_p0), [#allocation2], %s636_s5 }
  0x2e   : > { %902 = dma.done.wait (%p998_p6), %s189_s6, 2048  }
  0x2f   : > { %904 = vsyncadd (%p998_p6), %s189_s6, 4294965248  ;;  %v233_v0 = vld [vmem:[%s1189_s1] sm:$0xff]  ;;  %v234_v1 = vld [vmem:[%s1189_s1 + $0x8] sm:$0xff]  ;;  %vm254_vm0 = vcmask 883712   ;;  %vm303_vm1 = vcmask 1043456   ;;  %vm931_vm2 = vmmov 1  }
  0x30   : > { %v235_v2 = vld [vmem:[%s1189_s1 + $0x10] sm:$0xff]  ;;  %v748_v3 = vpack.c.bf16 %v234_v1, %v233_v0  ;;  %v236_v4 = vld [vmem:[%s1189_s1 + $0x18] sm:$0xff]  ;;  %v237_v6 = vld [vmem:[%s1189_s1 + $0x20] sm:$0xff]  ;;  %vm480_vm4 = vcmask 130048   ;;  %s665_s6 = sshll.u32 %s976_s16, 9  ;;  %s539_s16 = scalar_lea.sflag [#allocation4], %s1038_s30 }
  0x31   : > { %v752_v5 = vpack.c.bf16 %v236_v4, %v235_v2  ;;  %v238_v7 = vld [vmem:[%s1189_s1 + $0x28] sm:$0xff]  ;;  %v217_v8 = vld [vmem:[%s1042_s8] sm:$0xff]  ;;  %v239_v11 = vld [vmem:[%s1189_s1 + $0x30] sm:$0xff]  ;;  %s1141_s7 = scalar_lea.hbm %s1191_s3, %s665_s6  ;;  %s932_s10 = smov [#allocation5]  }
  0x32   : > { %749 = vmatprep.subr.bf16.mxu0 %v748_v3  ;;  %778 = vmatprep.subr.bf16.mxu1 %v748_v3  ;;  %v756_v9 = vpack.c.bf16 %v238_v7, %v237_v6  ;;  %v225_v10 = vld [vmem:[%s1042_s8 + $0x40] sm:$0xff]  ;;  %v240_v12 = vld [vmem:[%s1189_s1 + $0x38] sm:$0xff]  ;;  %v242_v15 = vld [vmem:[%s1189_s1 + $0x48] sm:$0xff]  ;;  %s861_s11 = sshll.u32 %s932_s10, 4  ;;  %s862_s11 = int_to_ptr.vmem [resolvable:$false] %s861_s11 }
  0x33   : > { %751 = vmatpush3.bf16.msra.mxu0 %v748_v3  ;;  %785 = vmatpush3.bf16.msra.mxu1 %v748_v3  ;;  %v760_v13 = vpack.c.bf16 %v240_v12, %v239_v11  ;;  %v241_v14 = vld [vmem:[%s1189_s1 + $0x40] sm:$0xff]  ;;  %v243_v17 = vld [vmem:[%s1189_s1 + $0x50] sm:$0xff]  ;;  %v244_v18 = vld [vmem:[%s1189_s1 + $0x58] sm:$0xff]  ;;  %s863_s17 = scalar_lea.vmem %s862_s11, 1024 }
  0x34   : > { %753 = vmatprep.subr.bf16.mxu0 %v752_v5  ;;  %779 = vmatprep.subr.bf16.mxu1 %v752_v5  ;;  %v764_v16 = vpack.c.bf16 %v242_v15, %v241_v14  ;;  %v768_v19 = vpack.c.bf16 %v244_v18, %v243_v17  ;;  %v245_v20 = vld [vmem:[%s1189_s1 + $0x60] sm:$0xff]  ;;  %v246_v21 = vld [vmem:[%s1189_s1 + $0x68] sm:$0xf]  ;;  %vm773_vm3 = vmpackc.low %vm303_vm1, %vm931_vm2 }
  0x35   : > { %724 = vmatprep.mubr.msk.f32.mxu0 %vm254_vm0, %v217_v8  ;;  %736 = vmatprep.mubr.msk.f32.mxu1 %vm254_vm0, %v225_v10  ;;  %v772_v22 = vpack.c.bf16 %v246_v21, %v245_v20  ;;  %v218_v23 = vld [vmem:[%s1042_s8 + $0x8] sm:$0xff]  ;;  %v219_v25 = vld [vmem:[%s1042_s8 + $0x10] sm:$0xff]  ;;  %v220_v27 = vld [vmem:[%s1042_s8 + $0x18] sm:$0xff] }
  0x36   : > { %v226_v24 = vld [vmem:[%s1042_s8 + $0x48] sm:$0xff]  ;;  %v227_v26 = vld [vmem:[%s1042_s8 + $0x50] sm:$0xff]  ;;  %v228_v28 = vld [vmem:[%s1042_s8 + $0x58] sm:$0xff] }
  0x37   : > { %755 = vmatpush3.bf16.msra.mxu0 %v752_v5  ;;  %786 = vmatpush3.bf16.msra.mxu1 %v752_v5  ;;  %v221_v29 = vld [vmem:[%s1042_s8 + $0x20] sm:$0xff]  ;;  %v222_v31 = vld [vmem:[%s1042_s8 + $0x28] sm:$0xff]  ;;  %v223_v33 = vld [vmem:[%s1042_s8 + $0x30] sm:$0xff] }
  0x38   : > { %757 = vmatprep.subr.bf16.mxu0 %v756_v9  ;;  %780 = vmatprep.subr.bf16.mxu1 %v756_v9  ;;  %v229_v30 = vld [vmem:[%s1042_s8 + $0x60] sm:$0xff]  ;;  %v230_v32 = vld [vmem:[%s1042_s8 + $0x68] sm:$0xff]  ;;  %v231_v34 = vld [vmem:[%s1042_s8 + $0x70] sm:$0xff] }
  0x39   : > { %v224_v35 = vld [vmem:[%s1042_s8 + $0x38] sm:$0xff]  ;;  %v638_v41 = vld [vmem:[%s1190_s2] ss:$0 sm:$0xff] }
  0x3a   : > { %v232_v36 = vld [vmem:[%s1042_s8 + $0x78] sm:$0xff]  ;;  %s637_s8 = sshll.u32 %s1038_s30, 5 }
  0x3b   : > { %759 = vmatpush3.bf16.msra.mxu0 %v756_v9  ;;  %787 = vmatpush3.bf16.msra.mxu1 %v756_v9  ;;  %s214_s5 = scalar_lea.vmem [#allocation5], %s637_s8 }
  0x3c   : > { %761 = vmatprep.subr.bf16.mxu0 %v760_v13  ;;  %781 = vmatprep.subr.bf16.mxu1 %v760_v13  ;;  %s553_s22 = sshll.u32 %s214_s5, 4  ;;  %s1143_s22 = int_to_ptr.vmem [resolvable:$true] %s553_s22 }
  0x3d   : > { %s857_s9 = scalar_lea.vmem %s1143_s22, 512  ;;  %p864_p4 = scmp.lt.s32.totalorder %s1143_s22, %s862_s11 }
  0x3e   : > { %p858_p1 = scmp.ne.s32.totalorder %s1143_s22, %s857_s9  ;;  %p865_p5 = scmp.lt.s32.totalorder %s863_s17, %s857_s9 }
  0x3f   : > { %763 = vmatpush3.bf16.msra.mxu0 %v760_v13  ;;  %788 = vmatpush3.bf16.msra.mxu1 %v760_v13 }
  0x40   : > { %765 = vmatprep.subr.bf16.mxu0 %v764_v16  ;;  %782 = vmatprep.subr.bf16.mxu1 %v764_v16  ;;  %p859_p2 = pnand %p858_p1, %p1003_p9  ;;  %p866_p6 = por %p865_p5, %p864_p4 }
  0x42   : > { %p860_p3 = pneg %p859_p2 }
  0x43   : > { %767 = vmatpush3.bf16.msra.mxu0 %v764_v16  ;;  %789 = vmatpush3.bf16.msra.mxu1 %v764_v16 }
  0x44   : > { %769 = vmatprep.subr.bf16.mxu0 %v768_v19  ;;  %783 = vmatprep.subr.bf16.mxu1 %v768_v19  ;;  %p867_p7 = pnand %p866_p6, %p860_p3 }
  0x47   : > { %771 = vmatpush3.bf16.msra.mxu0 %v768_v19  ;;  %790 = vmatpush3.bf16.msra.mxu1 %v768_v19 }
  0x48   : > { %774 = vmatprep.subr.msk.bf16.mxu0 %vm773_vm3, %v772_v22  ;;  %784 = vmatprep.subr.msk.bf16.mxu1 %vm773_vm3, %v772_v22 }
  0x4b   : > { %777 = vmatpush3.bf16.msk.msra.mxu0 %vm773_vm3, %v772_v22  ;;  %791 = vmatpush3.bf16.msk.msra.mxu1 %vm773_vm3, %v772_v22 }
  0x4e   : > { %725 = vmatmul.mubr.msk.f32.vlgmr.msra.gmra.mrb[0].mxu0 %vm254_vm0, %v218_v23  ;;  %737 = vmatmul.mubr.msk.f32.vlgmr.msra.gmra.mrb[0].mxu1 %vm254_vm0, %v226_v24 }
  0x4f   : > { %727 = vmatprep.mubr.msk.f32.mxu0 %vm254_vm0, %v219_v25  ;;  %739 = vmatprep.mubr.msk.f32.mxu1 %vm254_vm0, %v227_v26 }
  0x52   : > { %728 = vmatmul.mubr.msk.f32.gmra.mrb[2].mxu0 %vm254_vm0, %v220_v27  ;;  %740 = vmatmul.mubr.msk.f32.gmra.mrb[2].mxu1 %vm254_vm0, %v228_v28 }
  0x53   : > { %730 = vmatprep.mubr.msk.f32.mxu0 %vm254_vm0, %v221_v29  ;;  %742 = vmatprep.mubr.msk.f32.mxu1 %vm254_vm0, %v229_v30 }
  0x56   : > { %731 = vmatmul.mubr.msk.f32.gmra.mrb[4].mxu0 %vm254_vm0, %v222_v31  ;;  %743 = vmatmul.mubr.msk.f32.gmra.mrb[4].mxu1 %vm254_vm0, %v230_v32 }
  0x57   : > { %733 = vmatprep.mubr.msk.f32.mxu0 %vm254_vm0, %v223_v33  ;;  %745 = vmatprep.mubr.msk.f32.mxu1 %vm254_vm0, %v231_v34 }
  0x5a   : > { %734 = vmatmul.mubr.msk.f32.gmra.mrb[6].mxu0 %vm254_vm0, %v224_v35  ;;  %746 = vmatmul.mubr.msk.f32.gmra.mrb[6].mxu1 %vm254_vm0, %v232_v36 }
 0x121   : > { %v726_v37 = vpop.f32.mrb[0].mxu0  ;;  %v738_v38 = vpop.f32.mrb[0].mxu1 }
 0x122   : > { %v373_v39 = vpop.f32.mrb[1].mxu0  ;;  %v413_v40 = vpop.f32.mrb[1].mxu1  ;;  %v379_v44 = vadd.f32 %v726_v37, %v638_v41  ;;  %v419_v45 = vadd.f32 %v738_v38, %v638_v41 }
 0x123   : > { %v374_v48 = vadd.f32 %v638_v41, %v373_v39  ;;  %v414_v49 = vadd.f32 %v638_v41, %v413_v40 }
 0x124   : > { %v453_v54 = vmax.f32 %v379_v44, 0.0  ;;  %v461_v55 = vmax.f32 %v419_v45, 0.0 }
 0x125   : > { %v729_v42 = vpop.f32.mrb[2].mxu0  ;;  %v741_v43 = vpop.f32.mrb[2].mxu1  ;;  %v452_v60 = vmax.f32 %v374_v48, 0.0  ;;  %v460_v61 = vmax.f32 %v414_v49, 0.0 }
 0x126   : > { %v383_v46 = vpop.f32.mrb[3].mxu0  ;;  %v423_v47 = vpop.f32.mrb[3].mxu1  ;;  %v389_v50 = vadd.f32 %v729_v42, %v638_v41  ;;  %v429_v51 = vadd.f32 %v741_v43, %v638_v41 }
 0x127   : > { %v384_v0 = vadd.f32 %v638_v41, %v383_v46  ;;  %v424_v1 = vadd.f32 %v638_v41, %v423_v47 }
 0x128   : > { %v455_v4 = vmax.f32 %v389_v50, 0.0  ;;  %v463_v5 = vmax.f32 %v429_v51, 0.0 }
 0x129   : > { %v732_v52 = vpop.f32.mrb[4].mxu0  ;;  %v744_v53 = vpop.f32.mrb[4].mxu1  ;;  %v454_v20 = vmax.f32 %v384_v0, 0.0  ;;  %v462_v24 = vmax.f32 %v424_v1, 0.0 }
 0x12a   : > { %v399_v56 = vadd.f32 %v732_v52, %v638_v41  ;;  %v439_v57 = vadd.f32 %v744_v53, %v638_v41  ;;  %v393_v58 = vpop.f32.mrb[5].mxu0  ;;  %v433_v59 = vpop.f32.mrb[5].mxu1 }
 0x12b   : > { %v394_v62 = vadd.f32 %v638_v41, %v393_v58  ;;  %v434_v63 = vadd.f32 %v638_v41, %v433_v59 }
 0x12c   : > { %v457_v2 = vmax.f32 %v399_v56, 0.0  ;;  %v465_v3 = vmax.f32 %v439_v57, 0.0 }
 0x12d   : > { %v456_v6 = vmax.f32 %v394_v62, 0.0  ;;  %v464_v7 = vmax.f32 %v434_v63, 0.0  ;;  %v735_v8 = vpop.f32.mrb[6].mxu0  ;;  %v747_v9 = vpop.f32.mrb[6].mxu1 }
 0x12e   : > { %v469_v10 = vmax.f32 %v453_v54, %v457_v2  ;;  %v473_v11 = vmax.f32 %v461_v55, %v465_v3  ;;  %v409_v12 = vadd.f32 %v735_v8, %v638_v41  ;;  %v449_v13 = vadd.f32 %v747_v9, %v638_v41  ;;  %v403_v14 = vpop.f32.mrb[7].mxu0  ;;  %v443_v15 = vpop.f32.mrb[7].mxu1 }
 0x12f   : > { %v468_v16 = vmax.f32 %v452_v60, %v456_v6  ;;  %v472_v17 = vmax.f32 %v460_v61, %v464_v7  ;;  %v404_v18 = vadd.f32 %v638_v41, %v403_v14  ;;  %v444_v19 = vadd.f32 %v638_v41, %v443_v15 }
 0x130   : > { %v459_v21 = vmax.f32 %v409_v12, 0.0  ;;  %v467_v22 = vmax.f32 %v449_v13, 0.0  ;;  %v477_v23 = vmax.f32 %v469_v10, %v473_v11 }
 0x131   : > { %v458_v25 = vmax.f32 %v404_v18, 0.0  ;;  %v466_v26 = vmax.f32 %v444_v19, 0.0  ;;  %v476_v27 = vmax.f32 %v468_v16, %v472_v17 }
 0x132   : > { %v471_v28 = vmax.f32 %v455_v4, %v459_v21  ;;  %v475_v29 = vmax.f32 %v463_v5, %v467_v22  ;;  %v484_v36 = vsel %vm480_vm4, %v477_v23, 0.0 }
 0x133   : > { %v470_v30 = vmax.f32 %v454_v20, %v458_v25  ;;  %v474_v31 = vmax.f32 %v462_v24, %v466_v26  ;;  %v481_v32 = vsel %vm480_vm4, %v476_v27, 0.0 }
 0x134   : > { %482 = vadd.xlane.f32.xlu0 %v481_v32  ;;  %v479_v33 = vmax.f32 %v471_v28, %v475_v29 }
 0x135   : > { %v478_v34 = vmax.f32 %v470_v30, %v474_v31 }
 0x136   : > { %v490_v37 = vsel %vm480_vm4, %v479_v33, 0.0 }
 0x137   : > { %v487_v35 = vsel %vm480_vm4, %v478_v34, 0.0 }
 0x138   : > { %488 = vadd.xlane.f32.xlu1 %v487_v35  ;;  %485 = vadd.xlane.f32.xlu0 %v484_v36 }
 0x13c   : > { %491 = vadd.xlane.f32.xlu1 %v490_v37 }
 0x1c1   : > { %v483_v38 = vpop.xlane.xlu0 %482 }
 0x1c2   : > { %v494_v39 = vmul.f32 0.0625, %v483_v38 }
 0x1c4   : > { %v498_v40 = vsub.f32 %v476_v27, %v494_v39 }
 0x1c5   : > { %v489_v41 = vpop.xlane.xlu1 %488  ;;  %v486_v42 = vpop.xlane.xlu0 %485 }
 0x1c6   : > { %v496_v43 = vmul.f32 0.0625, %v489_v41  ;;  %v495_v44 = vmul.f32 0.0625, %v486_v42  ;;  %v502_v45 = vmul.f32 %v498_v40, %v498_v40 }
 0x1c8   : > { %v500_v46 = vsub.f32 %v478_v34, %v496_v43  ;;  %v499_v47 = vsub.f32 %v477_v23, %v495_v44  ;;  %v506_v48 = vsel %vm480_vm4, %v502_v45, 0.0 }
 0x1c9   : > { %v492_v49 = vpop.xlane.xlu1 %491  ;;  %507 = vadd.xlane.f32.xlu0 %v506_v48 }
 0x1ca   : > { %v497_v50 = vmul.f32 0.0625, %v492_v49  ;;  %v504_v51 = vmul.f32 %v500_v46, %v500_v46  ;;  %v503_v52 = vmul.f32 %v499_v47, %v499_v47 }
 0x1cc   : > { %v501_v53 = vsub.f32 %v479_v33, %v497_v50  ;;  %v512_v54 = vsel %vm480_vm4, %v504_v51, 0.0  ;;  %v509_v55 = vsel %vm480_vm4, %v503_v52, 0.0 }
 0x1cd   : > { %513 = vadd.xlane.f32.xlu0 %v512_v54  ;;  %510 = vadd.xlane.f32.xlu1 %v509_v55 }
 0x1ce   : > { %v505_v56 = vmul.f32 %v501_v53, %v501_v53 }
 0x1d0   : > { %v515_v57 = vsel %vm480_vm4, %v505_v56, 0.0 }
 0x1d1   : > { %516 = vadd.xlane.f32.xlu1 %v515_v57 }
 0x256   : > { %v508_v58 = vpop.xlane.xlu0 %507 }
 0x257   : > { %v518_v59 = vmul.f32 0.06666667, %v508_v58 }
 0x259   : > { %v522_v60 = vadd.f32 1e-07, %v518_v59 }
 0x25a   : > { %v511_v61 = vpop.xlane.xlu1 %510  ;;  %v514_v62 = vpop.xlane.xlu0 %513 }
 0x25b   : > { %849 = vrsqrt.f32 %v522_v60  ;;  %v519_v63 = vmul.f32 0.06666667, %v511_v61  ;;  %v520_v0 = vmul.f32 0.06666667, %v514_v62 }
 0x25d   : > { %v523_v1 = vadd.f32 1e-07, %v519_v63  ;;  %v524_v2 = vadd.f32 1e-07, %v520_v0 }
 0x25e   : > { %v517_v3 = vpop.xlane.xlu1 %516 }
 0x25f   : > { %851 = vrsqrt.f32 %v523_v1  ;;  %v521_v4 = vmul.f32 0.06666667, %v517_v3 }
 0x260   : > { %853 = vrsqrt.f32 %v524_v2 }
 0x261   : > { %v525_v5 = vadd.f32 1e-07, %v521_v4 }
 0x263   : > { %855 = vrsqrt.f32 %v525_v5 }
 0x265   : > { %v850_v6 = vpop.eup %849 }
 0x266   : > { %v530_v7 = vmul.f32 %v850_v6, %v498_v40 }
 0x268   : > { %534 = vst.msk [vmem:[%s214_s5] sm:$0xff] %vm480_vm4, %v530_v7 }
 0x269   : > { %v852_v8 = vpop.eup %851 }
 0x26a   : > { %v854_v9 = vpop.eup %853  ;;  %v531_v10 = vmul.f32 %v852_v8, %v499_v47 }
 0x26b   : > { %v532_v11 = vmul.f32 %v854_v9, %v500_v46 }
 0x26c   : > { %535 = vst.msk [vmem:[%s214_s5 + $0x8] sm:$0xff] %vm480_vm4, %v531_v10 }
 0x26d   : > { %v856_v12 = vpop.eup %855  ;;  %536 = vst.msk [vmem:[%s214_s5 + $0x10] sm:$0xff] %vm480_vm4, %v532_v11 }
 0x26e   : > { %v533_v13 = vmul.f32 %v856_v12, %v501_v53 }
 0x270   : > { %537 = vst.msk [vmem:[%s214_s5 + $0x18] sm:$0xff] %vm480_vm4, %v533_v13 }
 0x271   : > { %870 = shalt.err (!%p867_p7)
}
 0x272   : > { %s871_s23 = scalar_lea.hbm %s1141_s7, 512  ;;  %s875_s27 = scalar_lea.hbm %s1191_s3, 1024 }
 0x273   : > { %p872_p8 = scmp.ne.s32.totalorder %s1141_s7, %s871_s23  ;;  %p876_p0 = scmp.lt.u32.totalorder %s1141_s7, %s1191_s3 }
 0x274   : > { %p877_p1 = scmp.lt.u32.totalorder %s875_s27, %s871_s23  ;;  %p879_p3 = scmp.lt.u32.totalorder %s871_s23, %s1141_s7 }
 0x275   : > { %p873_p12 = pnand %p872_p8, %p1003_p9 }
 0x276   : > { %p878_p2 = por %p877_p1, %p876_p0 }
 0x277   : > { %p874_p13 = pneg %p873_p12 }
 0x278   : > { %p880_p4 = por %p879_p3, %p878_p2 }
 0x27a   : > { %p881_p5 = pnand %p880_p4, %p874_p13 }
 0x27c   : > { %884 = shalt.err (!%p881_p5)
}
 0x27d   : > { %s933_s8 = smov 128   ;;  %s934_s5 = smov 8  }
 0x27e   : > { %801 = dma.vmem_to_hbm [thread:$0]  (%p1003_p9), %s1143_s22, 512, %s1141_s7, %s539_s16, %s933_s8, %s933_s8, %s934_s5  }
 0x27f PF: > { %s568_s6 = sand.u32 1, %s911_s12   ;;  %p804_p6 = pnand %p628_p11, %p1007_p10 }
 0x280   : > { %s569_s26 = scalar_lea.sflag [#allocation4], %s568_s6 }
 0x281   : > { %906 = dma.done.wait (!%p804_p6), %s569_s26, 512  }
 0x282   : > { %908 = vsyncadd (!%p804_p6), %s569_s26, 4294966784  ;;  %p16_p7 = scmp.ge.s32.totalorder %s980_s18, 4   ;;  %s1196_s12 = smov %s915_s13 }
 0x283   : > { %s1197_s13 = smov %s919_s14  ;;  %s1198_s14 = smov %s992_s21 }
 0x284   : > { %s1199_s15 = smov %s980_s18  ;;  %18 = sbr.rel (!%p16_p7) target bundleno = 5 (0x5), region = 82 }
 0x28b   :  { %574 = vsyncpa [#allocation3], 1 }
 0x28c   :  { %576 = vsyncpa [#allocation3 + $0x1], 1 }
 0x28d   :  { %577 = vsyncpa [#allocation4], 1 }
 0x28e   :  { %579 = vsyncpa [#allocation4 + $0x1], 1 }

</bundles_post_ra>
